<compile_context>
chip_gen: v6e
topology: v6e:2x2x1
jax: 0.10.0
libtpu: 0.0.40
codegen_flags: <defaults>
</compile_context>

<pallas_src>
import jax
import jax.numpy as jnp
from jax import lax
from jax.experimental import pallas as pl
from jax.experimental.pallas import tpu as pltpu

_LANE = 128
_EPS = 1e-8
_TARGET_BLOCK_BYTES = 4 * 1024 * 1024  # ~4 MiB per input block


def _sublane_align(dtype) -> int:
    """Minimum sublane multiple for a (rows, 128) block of this dtype."""
    itemsize = jnp.dtype(dtype).itemsize
    return 8 * max(1, 4 // max(itemsize, 1))  # 8 (f32), 16 (bf16), 32 (int8)


def _default_num_cores() -> int:
    """2-way megacore split only on v7x (2 TensorCores per chip)."""
    try:
        kind = jax.devices()[0].device_kind.lower()
    except Exception:
        return 1
    return 2 if "v7" in kind else 1


def _make_nmse_kernel(m_rows: int, block_m: int, steps_per_core: int):
    """m_rows / block_m / steps_per_core are static Python ints."""
    folds = block_m // 8

    def _accumulate(yp_ref, yt_ref, sse_ref, den_ref, row_mask):
        yp = yp_ref[...].astype(jnp.float32)
        yt = yt_ref[...].astype(jnp.float32)
        d = yp - yt
        sq = d * d
        y2 = yt * yt
        if row_mask is not None:
            sq = jnp.where(row_mask, sq, 0.0)
            y2 = jnp.where(row_mask, y2, 0.0)
        # Layout-preserving fold: (block_m,128) -> (folds,8,128) -> (8,128).
        # Summing over the leading axis is plain vreg adds (VALU, no XLU).
        sse_ref[...] += jnp.sum(sq.reshape(folds, 8, _LANE), axis=0)[None]
        den_ref[...] += jnp.sum(y2.reshape(folds, 8, _LANE), axis=0)[None]

    def kernel(yp_ref, yt_ref, sse_ref, den_ref):
        c = pl.program_id(0)
        i = pl.program_id(1)

        @pl.when(i == 0)
        def _init():
            sse_ref[...] = jnp.zeros_like(sse_ref)
            den_ref[...] = jnp.zeros_like(den_ref)

        # Logical (unclamped) block id; used only for validity.  Overhang
        # steps (clamped in the index_map) get remaining <= 0 -> fully masked.
        t = c * steps_per_core + i
        remaining = m_rows - t * block_m  # rows (not elements) -> no overflow

        @pl.when(remaining >= block_m)
        def _full_block():  # fast path: >99% of steps, no iota / no selects
            _accumulate(yp_ref, yt_ref, sse_ref, den_ref, None)

        @pl.when(remaining < block_m)
        def _partial_block():  # boundary block / clamped overhang only
            row = lax.broadcasted_iota(jnp.int32, (block_m, _LANE), 0)
            _accumulate(yp_ref, yt_ref, sse_ref, den_ref, row < remaining)

    return kernel


def nmse_loss(y_pred, y_true, *, max_block_rows=None, num_cores=None):
    """Pallas implementation of nMSELoss.forward (returns a scalar f32)."""
    yp = jnp.asarray(y_pred)
    yt = jnp.asarray(y_true)
    assert yp.shape == yt.shape, "y_pred and y_true must have the same shape"
    if not jnp.issubdtype(yp.dtype, jnp.floating):
        yp = yp.astype(jnp.float32)
    if not jnp.issubdtype(yt.dtype, jnp.floating):
        yt = yt.astype(jnp.float32)
    yp = yp.reshape(-1)
    yt = yt.reshape(-1)

    n = yp.shape[0]
    if n == 0:
        return jnp.float32(0.0)

    # Ragged (<128-element) tail handled in plain JAX: avoids materializing
    # padded HBM copies of the full inputs just for a few trailing elements.
    n_tail = n % _LANE
    n_aligned = n - n_tail
    if n_tail:
        tp = yp[n_aligned:].astype(jnp.float32)
        tt = yt[n_aligned:].astype(jnp.float32)
        tail_sse = jnp.sum((tp - tt) ** 2)
        tail_den = jnp.sum(tt * tt)
    else:
        tail_sse = jnp.float32(0.0)
        tail_den = jnp.float32(0.0)

    if n_aligned == 0:
        # Degenerate case: fewer than 128 elements total (all "tail").
        return (tail_sse / (tail_den + _EPS)).astype(jnp.float32)

    m = n_aligned // _LANE
    yp2 = yp[:n_aligned].reshape(m, _LANE)
    yt2 = yt[:n_aligned].reshape(m, _LANE)

    # Block sizing by bytes (~4 MiB per input block), sublane-aligned.
    align = max(_sublane_align(yp2.dtype), _sublane_align(yt2.dtype))
    itemsize = max(jnp.dtype(yp2.dtype).itemsize, jnp.dtype(yt2.dtype).itemsize)
    if max_block_rows is None:
        cap = (_TARGET_BLOCK_BYTES // (_LANE * itemsize)) // align * align
    else:
        cap = (max_block_rows // align) * align
    cap = max(align, cap)
    block_m = min(cap, pl.cdiv(m, align) * align)
    total_blocks = pl.cdiv(m, block_m)

    ncores = num_cores if num_cores is not None else _default_num_cores()
    ncores = max(1, min(ncores, total_blocks))
    steps_per_core = pl.cdiv(total_blocks, ncores)

    def in_map(c, i):
        # Clamp so the DMA window stays in range; overhang steps of the last
        # core re-read the final block but are fully masked in-kernel.
        return (jnp.minimum(c * steps_per_core + i, total_blocks - 1), 0)

    kernel = _make_nmse_kernel(m, block_m, steps_per_core)

    sse_partial, den_partial = pl.pallas_call(
        kernel,
        out_shape=(
            jax.ShapeDtypeStruct((ncores, 8, _LANE), jnp.float32),
            jax.ShapeDtypeStruct((ncores, 8, _LANE), jnp.float32),
        ),
        grid_spec=pltpu.PrefetchScalarGridSpec(
            num_scalar_prefetch=0,
            grid=(ncores, steps_per_core),
            in_specs=[
                pl.BlockSpec((block_m, _LANE), in_map),
                pl.BlockSpec((block_m, _LANE), in_map),
            ],
            out_specs=[
                pl.BlockSpec((1, 8, _LANE), lambda c, i: (c, 0, 0)),
                pl.BlockSpec((1, 8, _LANE), lambda c, i: (c, 0, 0)),
            ],
        ),
        compiler_params=pltpu.CompilerParams(
            dimension_semantics=("parallel", "arbitrary"),
            vmem_limit_bytes=32 * 1024 * 1024,
        ),
    )(yp2, yt2)

    # Tiny final combine (ncores x 8 x 128 partials) + divide in plain JAX.
    sse = jnp.sum(sse_partial) + tail_sse
    den = jnp.sum(den_partial) + tail_den
    return (sse / (den + _EPS)).astype(jnp.float32)


if __name__ == "__main__":
    key = jax.random.PRNGKey(0)
    k1, k2, k3, k4, k5, k6 = jax.random.split(key, 6)

    def ref_nmse(a, b):
        a = a.astype(jnp.float32)
        b = b.astype(jnp.float32)
        return jnp.sum((a - b) ** 2) / (jnp.sum(b * b) + 1e-8)

    # 1) Lane-aligned f32 inputs (kernel-only path).
    y_pred = jax.random.normal(k1, (2, 4, 16, 16), dtype=jnp.float32)
    y_true = jax.random.normal(k2, (2, 4, 16, 16), dtype=jnp.float32)
    loss = jax.block_until_ready(nmse_loss(y_pred, y_true))
    ref = ref_nmse(y_pred, y_true)
    assert jnp.allclose(loss, ref, rtol=1e-5, atol=1e-6), (loss, ref)

    # 2) Ragged size: 128-aligned prefix in the kernel + <128 tail in JAX.
    a = jax.random.normal(k3, (3, 7, 11), dtype=jnp.float32)
    b = jax.random.normal(k4, (3, 7, 11), dtype=jnp.float32)
    loss2 = jax.block_until_ready(nmse_loss(a, b))
    ref2 = ref_nmse(a, b)
    assert jnp.allclose(loss2, ref2, rtol=1e-5, atol=1e-6), (loss2, ref2)

    # 3) Multi-block + partial boundary block + forced 2-core split: exercises
    #    cross-step accumulation, the row-mask slow path and clamped overhang.
    c = jax.random.normal(k5, (37, 80), dtype=jnp.float32)
    d = jax.random.normal(k6, (37, 80), dtype=jnp.float32)
    loss3 = jax.block_until_ready(nmse_loss(c, d, max_block_rows=8, num_cores=2))
    ref3 = ref_nmse(c, d)
    assert jnp.allclose(loss3, ref3, rtol=1e-5, atol=1e-6), (loss3, ref3)

    # 4) bf16 inputs stream at bf16 bytes and are upcast to f32 in-register.
    e = jax.random.normal(k1, (2, 4, 16, 16), dtype=jnp.bfloat16)
    f = jax.random.normal(k2, (2, 4, 16, 16), dtype=jnp.bfloat16)
    loss4 = jax.block_until_ready(nmse_loss(e, f))
    ref4 = ref_nmse(e, f)
    assert jnp.allclose(loss4, ref4, rtol=1e-4, atol=1e-6), (loss4, ref4)

    print("KERNEL_OK")
</pallas_src>

<mosaic_0001>
module attributes {stable_mosaic.version = 11 : i64} {
  func.func @kernel(%arg0: i32, %arg1: i32, %arg2: memref<16x128xf32, #tpu.memory_space<vmem>>, %arg3: memref<16x128xf32, #tpu.memory_space<vmem>>, %arg4: memref<1x8x128xf32, #tpu.memory_space<vmem>>, %arg5: memref<1x8x128xf32, #tpu.memory_space<vmem>>) attributes {dimension_semantics = [#tpu.dimension_semantics<parallel>, #tpu.dimension_semantics<arbitrary>], iteration_bounds = array<i64: 1, 1>, scalar_prefetch = 0 : i64, scratch_operands = 0 : i64, tpu.core_type = #tpu.core_type<tc>, window_params = [{transform_indices = @transform_0, window_bounds = array<i64: 16, 128>}, {transform_indices = @transform_1, window_bounds = array<i64: 16, 128>}, {transform_indices = @transform_2, window_bounds = array<i64: 1, 8, 128>}, {transform_indices = @transform_3, window_bounds = array<i64: 1, 8, 128>}]} {
    %c0_i32 = arith.constant 0 : i32
    %0 = arith.cmpi eq, %arg1, %c0_i32 : i32
    %1 = arith.extui %0 : i1 to i32
    %c0_i32_0 = arith.constant 0 : i32
    %2 = arith.cmpi ne, %1, %c0_i32_0 : i32
    scf.if %2 {
      %cst = arith.constant 0.000000e+00 : f32
      %13 = vector.broadcast %cst : f32 to vector<1x8x128xf32>
      %c0 = arith.constant 0 : index
      %c0_6 = arith.constant 0 : index
      %c0_7 = arith.constant 0 : index
      %14 = vector.load %arg4[%c0, %c0_6, %c0_7] : memref<1x8x128xf32, #tpu.memory_space<vmem>>, vector<1x8x128xf32>
      tpu.vector_store %arg4[%c0, %c0_6, %c0_7], %13 {strides = array<i32>} : memref<1x8x128xf32, #tpu.memory_space<vmem>>, vector<1x8x128xf32>,
      %cst_8 = arith.constant 0.000000e+00 : f32
      %15 = vector.broadcast %cst_8 : f32 to vector<1x8x128xf32>
      %c0_9 = arith.constant 0 : index
      %c0_10 = arith.constant 0 : index
      %c0_11 = arith.constant 0 : index
      %16 = vector.load %arg5[%c0_9, %c0_10, %c0_11] : memref<1x8x128xf32, #tpu.memory_space<vmem>>, vector<1x8x128xf32>
      tpu.vector_store %arg5[%c0_9, %c0_10, %c0_11], %15 {strides = array<i32>} : memref<1x8x128xf32, #tpu.memory_space<vmem>>, vector<1x8x128xf32>,
    } else {
    }
    %c1_i32 = arith.constant 1 : i32
    %3 = arith.muli %arg0, %c1_i32 : i32
    %4 = arith.addi %3, %arg1 : i32
    %c16_i32 = arith.constant 16 : i32
    %5 = arith.muli %4, %c16_i32 : i32
    %c16_i32_1 = arith.constant 16 : i32
    %6 = arith.subi %c16_i32_1, %5 : i32
    %c16_i32_2 = arith.constant 16 : i32
    %7 = arith.cmpi sge, %6, %c16_i32_2 : i32
    %8 = arith.extui %7 : i1 to i32
    %c0_i32_3 = arith.constant 0 : i32
    %9 = arith.cmpi ne, %8, %c0_i32_3 : i32
    scf.if %9 {
      %c0 = arith.constant 0 : index
      %c0_6 = arith.constant 0 : index
      %13 = vector.load %arg2[%c0, %c0_6] : memref<16x128xf32, #tpu.memory_space<vmem>>, vector<16x128xf32>
      %c0_7 = arith.constant 0 : index
      %c0_8 = arith.constant 0 : index
      %14 = vector.load %arg3[%c0_7, %c0_8] : memref<16x128xf32, #tpu.memory_space<vmem>>, vector<16x128xf32>
      %15 = arith.subf %13, %14 : vector<16x128xf32>
      %16 = arith.mulf %15, %15 : vector<16x128xf32>
      %17 = arith.mulf %14, %14 : vector<16x128xf32>
      %c0_9 = arith.constant 0 : index
      %c0_10 = arith.constant 0 : index
      %c0_11 = arith.constant 0 : index
      %18 = vector.load %arg4[%c0_9, %c0_10, %c0_11] : memref<1x8x128xf32, #tpu.memory_space<vmem>>, vector<1x8x128xf32>
      %19 = vector.shape_cast %16 : vector<16x128xf32> to vector<2x8x128xf32>
      %cst = arith.constant dense<0.000000e+00> : vector<8x128xf32>
      %20 = vector.multi_reduction <add>, %19, %cst [0] : vector<2x8x128xf32> to vector<8x128xf32>
      %21 = vector.shape_cast %20 : vector<8x128xf32> to vector<1x8x128xf32>
      %22 = arith.addf %18, %21 : vector<1x8x128xf32>
      %c0_12 = arith.constant 0 : index
      %c0_13 = arith.constant 0 : index
      %c0_14 = arith.constant 0 : index
      %23 = vector.load %arg4[%c0_12, %c0_13, %c0_14] : memref<1x8x128xf32, #tpu.memory_space<vmem>>, vector<1x8x128xf32>
      tpu.vector_store %arg4[%c0_12, %c0_13, %c0_14], %22 {strides = array<i32>} : memref<1x8x128xf32, #tpu.memory_space<vmem>>, vector<1x8x128xf32>,
      %c0_15 = arith.constant 0 : index
      %c0_16 = arith.constant 0 : index
      %c0_17 = arith.constant 0 : index
      %24 = vector.load %arg5[%c0_15, %c0_16, %c0_17] : memref<1x8x128xf32, #tpu.memory_space<vmem>>, vector<1x8x128xf32>
      %25 = vector.shape_cast %17 : vector<16x128xf32> to vector<2x8x128xf32>
      %cst_18 = arith.constant dense<0.000000e+00> : vector<8x128xf32>
      %26 = vector.multi_reduction <add>, %25, %cst_18 [0] : vector<2x8x128xf32> to vector<8x128xf32>
      %27 = vector.shape_cast %26 : vector<8x128xf32> to vector<1x8x128xf32>
      %28 = arith.addf %24, %27 : vector<1x8x128xf32>
      %c0_19 = arith.constant 0 : index
      %c0_20 = arith.constant 0 : index
      %c0_21 = arith.constant 0 : index
      %29 = vector.load %arg5[%c0_19, %c0_20, %c0_21] : memref<1x8x128xf32, #tpu.memory_space<vmem>>, vector<1x8x128xf32>
      tpu.vector_store %arg5[%c0_19, %c0_20, %c0_21], %28 {strides = array<i32>} : memref<1x8x128xf32, #tpu.memory_space<vmem>>, vector<1x8x128xf32>,
    } else {
    }
    %c16_i32_4 = arith.constant 16 : i32
    %10 = arith.cmpi slt, %6, %c16_i32_4 : i32
    %11 = arith.extui %10 : i1 to i32
    %c0_i32_5 = arith.constant 0 : i32
    %12 = arith.cmpi ne, %11, %c0_i32_5 : i32
    scf.if %12 {
      %13 = tpu.iota {dimensions = array<i32: 0>} : vector<16x128xi32>
      %14 = vector.broadcast %6 : i32 to vector<16x128xi32>
      %15 = arith.cmpi slt, %13, %14 : vector<16x128xi32>
      %c0 = arith.constant 0 : index
      %c0_6 = arith.constant 0 : index
      %16 = vector.load %arg2[%c0, %c0_6] : memref<16x128xf32, #tpu.memory_space<vmem>>, vector<16x128xf32>
      %c0_7 = arith.constant 0 : index
      %c0_8 = arith.constant 0 : index
      %17 = vector.load %arg3[%c0_7, %c0_8] : memref<16x128xf32, #tpu.memory_space<vmem>>, vector<16x128xf32>
      %18 = arith.subf %16, %17 : vector<16x128xf32>
      %19 = arith.mulf %18, %18 : vector<16x128xf32>
      %20 = arith.mulf %17, %17 : vector<16x128xf32>
      %cst = arith.constant 0.000000e+00 : f32
      %21 = vector.broadcast %cst : f32 to vector<16x128xf32>
      %22 = arith.select %15, %19, %21 : vector<16x128xi1>, vector<16x128xf32>
      %cst_9 = arith.constant 0.000000e+00 : f32
      %23 = vector.broadcast %cst_9 : f32 to vector<16x128xf32>
      %24 = arith.select %15, %20, %23 : vector<16x128xi1>, vector<16x128xf32>
      %c0_10 = arith.constant 0 : index
      %c0_11 = arith.constant 0 : index
      %c0_12 = arith.constant 0 : index
      %25 = vector.load %arg4[%c0_10, %c0_11, %c0_12] : memref<1x8x128xf32, #tpu.memory_space<vmem>>, vector<1x8x128xf32>
      %26 = vector.shape_cast %22 : vector<16x128xf32> to vector<2x8x128xf32>
      %cst_13 = arith.constant dense<0.000000e+00> : vector<8x128xf32>
      %27 = vector.multi_reduction <add>, %26, %cst_13 [0] : vector<2x8x128xf32> to vector<8x128xf32>
      %28 = vector.shape_cast %27 : vector<8x128xf32> to vector<1x8x128xf32>
      %29 = arith.addf %25, %28 : vector<1x8x128xf32>
      %c0_14 = arith.constant 0 : index
      %c0_15 = arith.constant 0 : index
      %c0_16 = arith.constant 0 : index
      %30 = vector.load %arg4[%c0_14, %c0_15, %c0_16] : memref<1x8x128xf32, #tpu.memory_space<vmem>>, vector<1x8x128xf32>
      tpu.vector_store %arg4[%c0_14, %c0_15, %c0_16], %29 {strides = array<i32>} : memref<1x8x128xf32, #tpu.memory_space<vmem>>, vector<1x8x128xf32>,
      %c0_17 = arith.constant 0 : index
      %c0_18 = arith.constant 0 : index
      %c0_19 = arith.constant 0 : index
      %31 = vector.load %arg5[%c0_17, %c0_18, %c0_19] : memref<1x8x128xf32, #tpu.memory_space<vmem>>, vector<1x8x128xf32>
      %32 = vector.shape_cast %24 : vector<16x128xf32> to vector<2x8x128xf32>
      %cst_20 = arith.constant dense<0.000000e+00> : vector<8x128xf32>
      %33 = vector.multi_reduction <add>, %32, %cst_20 [0] : vector<2x8x128xf32> to vector<8x128xf32>
      %34 = vector.shape_cast %33 : vector<8x128xf32> to vector<1x8x128xf32>
      %35 = arith.addf %31, %34 : vector<1x8x128xf32>
      %c0_21 = arith.constant 0 : index
      %c0_22 = arith.constant 0 : index
      %c0_23 = arith.constant 0 : index
      %36 = vector.load %arg5[%c0_21, %c0_22, %c0_23] : memref<1x8x128xf32, #tpu.memory_space<vmem>>, vector<1x8x128xf32>
      tpu.vector_store %arg5[%c0_21, %c0_22, %c0_23], %35 {strides = array<i32>} : memref<1x8x128xf32, #tpu.memory_space<vmem>>, vector<1x8x128xf32>,
    } else {
    }
    return
  }
  func.func @transform_0(%arg0: i32, %arg1: i32) -> (i32, i32) {
    %c1_i32 = arith.constant 1 : i32
    %0 = arith.muli %arg0, %c1_i32 : i32
    %1 = arith.addi %0, %arg1 : i32
    %c0_i32 = arith.constant 0 : i32
    %2 = arith.minsi %1, %c0_i32 : i32
    %c0_i32_0 = arith.constant 0 : i32
    %c0_i32_1 = arith.constant 0 : i32
    return %2, %c0_i32_0 : i32, i32
  }
  func.func @transform_1(%arg0: i32, %arg1: i32) -> (i32, i32) {
    %c1_i32 = arith.constant 1 : i32
    %0 = arith.muli %arg0, %c1_i32 : i32
    %1 = arith.addi %0, %arg1 : i32
    %c0_i32 = arith.constant 0 : i32
    %2 = arith.minsi %1, %c0_i32 : i32
    %c0_i32_0 = arith.constant 0 : i32
    %c0_i32_1 = arith.constant 0 : i32
    return %2, %c0_i32_0 : i32, i32
  }
  func.func @transform_2(%arg0: i32, %arg1: i32) -> (i32, i32, i32) {
    %c0_i32 = arith.constant 0 : i32
    %c0_i32_0 = arith.constant 0 : i32
    %c0_i32_1 = arith.constant 0 : i32
    return %arg0, %c0_i32, %c0_i32_0 : i32, i32, i32
  }
  func.func @transform_3(%arg0: i32, %arg1: i32) -> (i32, i32, i32) {
    %c0_i32 = arith.constant 0 : i32
    %c0_i32_0 = arith.constant 0 : i32
    %c0_i32_1 = arith.constant 0 : i32
    return %arg0, %c0_i32, %c0_i32_0 : i32, i32, i32
  }
}

</mosaic_0001>

<bundles_post_ra>
// kernel: tpu_custom_call.1
= control target key start
LH: loop header
LB: loop body
LE: loop exit
PB: predicated region body
PF: predicated region fallthrough
CT: control target
= control target key end

     0   :  { %9 = vsyncpa [#allocation3], 0  ;;  %s293_s0 = inlined_call_operand.hbm [shape: f32[16,128], index: 0, kind: input, shape index: {}]   ;;  %s294_s1 = inlined_call_operand.hbm [shape: f32[16,128], index: 1, kind: input, shape index: {}]   ;;  %s295_s2 = inlined_call_operand.hbm [shape: f32[1,8,128], index: 2, kind: output, shape index: {0}]   ;;  %s296_s3 = inlined_call_operand.hbm [shape: f32[1,8,128], index: 3, kind: output, shape index: {1}]  }
   0x1   :  { %10 = vsyncpa [#allocation6], 0 }
   0x2   :  { %11 = vsyncpa [#allocation4], 0 }
   0x3   :  { %12 = vsyncpa [#allocation9], 0  ;;  %s255_s12 = smov [#allocation2]  }
   0x4   :  { %s24_s13 = sshll.u32 %s255_s12, 4  ;;  %s25_s13 = int_to_ptr.vmem [resolvable:$true] %s24_s13 }
   0x5   :  { %s175_s14 = scalar_lea.vmem %s25_s13, 256  ;;  %p180_p1 = scmp.lt.s32.totalorder %s25_s13, %s25_s13 }
   0x6   :  { %p176_p0 = scmp.ne.s32.totalorder %s25_s13, %s175_s14  ;;  %p181_p2 = scmp.lt.s32.totalorder %s175_s14, %s175_s14 }
   0x8   :  { %p182_p3 = por %p181_p2, %p180_p1 }
   0xa   :  { %p183_p4 = pnand %p182_p3, %p176_p0 }
   0xc   :  { %186 = shalt.err (!%p183_p4)
}
   0xd   :  { %s256_s15 = smov 128   ;;  %s257_s16 = smov 8  }
   0xe   :  { %30 = dma.hbm_to_vmem [thread:$0]  %s293_s0, 256, %s25_s13, [#allocation3], %s256_s15, %s256_s15, %s257_s16  }
   0xf   :  { %s258_s19 = smov [#allocation5]  }
  0x10   :  { %s42_s20 = sshll.u32 %s258_s19, 4  ;;  %s43_s20 = int_to_ptr.vmem [resolvable:$true] %s42_s20 }
  0x11   :  { %s195_s21 = scalar_lea.vmem %s43_s20, 256  ;;  %p200_p6 = scmp.lt.s32.totalorder %s43_s20, %s43_s20 }
  0x12   :  { %p196_p5 = scmp.ne.s32.totalorder %s43_s20, %s195_s21  ;;  %p201_p7 = scmp.lt.s32.totalorder %s195_s21, %s195_s21 }
  0x14   :  { %p202_p8 = por %p201_p7, %p200_p6 }
  0x16   :  { %p203_p9 = pnand %p202_p8, %p196_p5 }
  0x18   :  { %206 = shalt.err (!%p203_p9)
}
  0x19   :  { %48 = dma.hbm_to_vmem [thread:$0]  %s294_s1, 256, %s43_s20, [#allocation6], %s256_s15, %s256_s15, %s257_s16  }
  0x1a   :  { %247 = dma.done.wait [#allocation3], 256  }
  0x1b   :  { %248 = vsyncadd [#allocation3], 4294967040 }
  0x1c   :  { %249 = dma.done.wait [#allocation6], 256  }
  0x1d   :  { %250 = vsyncadd [#allocation6], 4294967040  ;;  %v76_v0 = vld [vmem:[#allocation2] sm:$0xff]  ;;  %v77_v1 = vld [vmem:[#allocation2 + $0x8] sm:$0xff]  ;;  %s259_s0 = smov [#allocation8]   ;;  %s260_s25 = smov [#allocation7]  }
  0x1e   :  { %v78_v2 = vld [vmem:[#allocation5] sm:$0xff]  ;;  %v79_v3 = vld [vmem:[#allocation5 + $0x8] sm:$0xff]  ;;  %s142_s24 = sshll.u32 %s259_s0, 4  ;;  %s132_s26 = sshll.u32 %s260_s25, 4  ;;  %s143_s24 = int_to_ptr.vmem [resolvable:$true] %s142_s24  ;;  %s133_s26 = int_to_ptr.vmem [resolvable:$true] %s132_s26 }
  0x1f   :  { %v80_v4 = vsub.f32 %v76_v0, %v78_v2  ;;  %v84_v5 = vmul.f32 %v78_v2, %v78_v2  ;;  %v81_v6 = vsub.f32 %v77_v1, %v79_v3  ;;  %v85_v7 = vmul.f32 %v79_v3, %v79_v3  ;;  %s207_s1 = scalar_lea.vmem %s143_s24, 128  ;;  %p212_p11 = scmp.lt.s32.totalorder %s143_s24, %s143_s24 }
  0x20   :  { %p208_p10 = scmp.ne.s32.totalorder %s143_s24, %s207_s1  ;;  %p213_p12 = scmp.lt.s32.totalorder %s207_s1, %s207_s1 }
  0x21   :  { %v82_v8 = vmul.f32 %v80_v4, %v80_v4  ;;  %v83_v9 = vmul.f32 %v81_v6, %v81_v6  ;;  %v91_v10 = vadd.f32 %v85_v7, %v84_v5 }
  0x22   :  { %p214_p13 = por %p213_p12, %p212_p11 }
  0x23   :  { %v87_v11 = vadd.f32 %v83_v9, %v82_v8  ;;  %93 = vst [vmem:[#allocation8] sm:$0xff] %v91_v10 }
  0x24   :  { %p215_p0 = pnand %p214_p13, %p208_p10 }
  0x26   :  { %218 = shalt.err (!%p215_p0)
}
  0x27   :  { %145 = dma.vmem_to_hbm [thread:$0]  %s143_s24, 128, %s296_s3, [#allocation9]   ;;  %89 = vst [vmem:[#allocation7] sm:$0xff] %v87_v11 }
  0x28   :  { %s227_s29 = scalar_lea.vmem %s133_s26, 128  ;;  %p232_p2 = scmp.lt.s32.totalorder %s133_s26, %s133_s26 }
  0x29   :  { %p228_p1 = scmp.ne.s32.totalorder %s133_s26, %s227_s29  ;;  %p233_p3 = scmp.lt.s32.totalorder %s227_s29, %s227_s29 }
  0x2b   :  { %p234_p4 = por %p233_p3, %p232_p2 }
  0x2d   :  { %p235_p5 = pnand %p234_p4, %p228_p1 }
  0x2f   :  { %238 = shalt.err (!%p235_p5)
}
  0x30   :  { %135 = dma.vmem_to_hbm [thread:$0]  %s133_s26, 128, %s295_s2, [#allocation4]  }
  0x31   :  { %251 = dma.done.wait [#allocation4], 128  }
  0x32   :  { %252 = vsyncadd [#allocation4], 4294967168 }
  0x33   :  { %253 = dma.done.wait [#allocation9], 128  }
  0x34   :  { %254 = vsyncadd [#allocation9], 4294967168 }
  0x35   :  { %152 = vsyncpa [#allocation3], 1 }
  0x36   :  { %153 = vsyncpa [#allocation6], 1 }
  0x37   :  { %154 = vsyncpa [#allocation4], 1 }
  0x38   :  { %155 = vsyncpa [#allocation9], 1 }

</bundles_post_ra>
